<compile_context>
chip_gen: v7x
topology: tpu7x:2x2x1
jax: 0.10.0
libtpu: 0.0.40
codegen_flags: <defaults>
</compile_context>

<pallas_src>
import jax
import jax.numpy as jnp
from jax.experimental import pallas as pl
from jax.experimental.pallas import tpu as pltpu

HIDDEN = 256
LN_EPS = 1e-5
LRELU_SLOPE = 0.01
DEFAULT_TILE_B = 2048  # target batch tile for large-batch calls


def _round_up(x, m):
    return ((x + m - 1) // m) * m


def _leaky_relu(x):
    # max-form: one mul + one max (vs. cmp + select)
    return jnp.maximum(x, LRELU_SLOPE * x)


def _layer_norm(x, gamma, beta):
    mu = jnp.mean(x, axis=-1, keepdims=True)
    xc = x - mu
    var = jnp.mean(xc * xc, axis=-1, keepdims=True)
    inv = jax.lax.rsqrt(var + LN_EPS)
    return xc * inv * gamma + beta


def critic_kernel(x_ref, w1_ref, w2_ref, vec_ref, o_ref):
    # vec_ref rows: 0=b1, 1=g1, 2=be1, 3=b2, 4=w3' (=w3*g2) ; [5,0] = b3' (=b3+be2.w3)
    b1 = vec_ref[0:1, :]
    g1 = vec_ref[1:2, :]
    be1 = vec_ref[2:3, :]
    b2 = vec_ref[3:4, :]
    w3p = vec_ref[4:5, :]
    b3p = vec_ref[5:6, 0:1]

    # Layer 1: Linear(state_dim, 256) [bf16 MXU, fp32 acc] + LeakyReLU + LayerNorm.
    h = jnp.dot(x_ref[...], w1_ref[...], preferred_element_type=jnp.float32) + b1
    h = _layer_norm(_leaky_relu(h), g1, be1)

    # Layer 2: Linear(256, 256) [bf16 MXU, fp32 acc] + LeakyReLU.
    h = jnp.dot(h.astype(jnp.bfloat16), w2_ref[...],
                preferred_element_type=jnp.float32) + b2
    h = _leaky_relu(h)

    # LayerNorm-2 (affine folded into the head) + Linear(256, 1).
    mu = jnp.mean(h, axis=-1, keepdims=True)
    xc = h - mu
    var = jnp.mean(xc * xc, axis=-1, keepdims=True)
    inv = jax.lax.rsqrt(var + LN_EPS)
    xn = xc * inv
    out = jnp.sum(xn * w3p, axis=-1, keepdims=True) + b3p
    o_ref[...] = out.astype(o_ref.dtype)


def _choose_tile_b(B, target):
    """Batch tile: big enough to amortize step overhead, small enough for tiny B,
    and keeping >= 2 grid steps for v7x's two TensorCores when B is large."""
    target = max(_round_up(target, 8), 8)
    rounded_b = max(_round_up(B, 8), 8)
    half = _round_up(pl.cdiv(B, 2), 128)          # >= 2 steps when B is large
    tile = min(target, half, rounded_b)
    return max(tile, 8)


def _vmem_estimate_bytes(tile_b, state_dim):
    x_tile = 2 * tile_b * state_dim * 2            # double-buffered bf16 x tile
    out_tile = 2 * tile_b * 4                      # double-buffered output column
    weights = (state_dim * HIDDEN + HIDDEN * HIDDEN) * 2 + 8 * HIDDEN * 4
    interm = 4 * tile_b * HIDDEN * 4               # ~4 live fp32 (tile_b,256) temps
    bf16_copy = tile_b * HIDDEN * 2                # h cast for matmul2
    return x_tile + out_tile + weights + interm + bf16_copy


def critic_forward(state, params, *, tile_b=None):
    """state: [B, state_dim] float32 -> [B, 1] float32."""
    w1, b1, g1, be1, w2, b2, g2, be2, w3, b3 = params
    B, state_dim = state.shape

    tb = _choose_tile_b(B, DEFAULT_TILE_B if tile_b is None else tile_b)
    grid_b = pl.cdiv(B, tb)
    b_pad = grid_b * tb

    # Fold LayerNorm-2's affine into the head (host-side, exact up to fp32 reassoc).
    w3_row = w3.reshape(1, HIDDEN).astype(jnp.float32)
    w3p = (w3_row * g2.reshape(1, HIDDEN)).astype(jnp.float32)
    b3p = (b3.reshape(()) +
           jnp.dot(be2.reshape(HIDDEN).astype(jnp.float32),
                   w3.reshape(HIDDEN).astype(jnp.float32)))

    # Pack the five (1,256) vectors and the scalar b3' into a single (8,256) tile.
    vecs = jnp.zeros((8, HIDDEN), jnp.float32)
    vecs = vecs.at[0].set(b1.reshape(HIDDEN))
    vecs = vecs.at[1].set(g1.reshape(HIDDEN))
    vecs = vecs.at[2].set(be1.reshape(HIDDEN))
    vecs = vecs.at[3].set(b2.reshape(HIDDEN))
    vecs = vecs.at[4].set(w3p.reshape(HIDDEN))
    vecs = vecs.at[5, 0].set(b3p)

    # bf16 matmul operands (fp32 accumulation happens inside the kernel).
    x_bf = state.astype(jnp.bfloat16)
    w1_bf = w1.astype(jnp.bfloat16)
    w2_bf = w2.astype(jnp.bfloat16)

    if b_pad != B:
        x_bf = jnp.pad(x_bf, ((0, b_pad - B), (0, 0)))

    # Raise the scoped-VMEM limit only if the footprint exceeds v5e's 16-MiB
    # default; cap below v7x's 64-MiB physical VMEM.
    est = _vmem_estimate_bytes(tb, state_dim)
    vmem_limit = None
    if est > 12 * 1024 * 1024:
        vmem_limit = min(int(est * 2), 48 * 1024 * 1024)

    def resident(a):  # full-array block, VMEM-resident across all grid steps
        return pl.BlockSpec(a.shape, lambda i: (0,) * a.ndim)

    out = pl.pallas_call(
        critic_kernel,
        out_shape=jax.ShapeDtypeStruct((b_pad, 1), jnp.float32),
        grid_spec=pltpu.PrefetchScalarGridSpec(
            num_scalar_prefetch=0,
            grid=(grid_b,),
            in_specs=[
                pl.BlockSpec((tb, state_dim), lambda i: (i, 0)),  # x tile
                resident(w1_bf),
                resident(w2_bf),
                resident(vecs),
            ],
            out_specs=pl.BlockSpec((tb, 1), lambda i: (i, 0)),
        ),
        compiler_params=pltpu.CompilerParams(
            dimension_semantics=("parallel",),    # batch axis -> both TCs on v7x
            vmem_limit_bytes=vmem_limit,
        ),
    )(x_bf, w1_bf, w2_bf, vecs)
    return out[:B]


def init_params(key, state_dim):
    """Deterministic synthetic init (PyTorch-like uniform fan-in scaling).
    LN gamma/beta are randomized (PyTorch default is ones/zeros) to exercise
    the LN-affine-into-head fold in the correctness check."""
    ks = jax.random.split(key, 10)

    def lin(kw, kb, fan_in, fan_out):
        bound = 1.0 / jnp.sqrt(jnp.float32(fan_in))
        w = jax.random.uniform(kw, (fan_in, fan_out), jnp.float32, -bound, bound)
        b = jax.random.uniform(kb, (1, fan_out), jnp.float32, -bound, bound)
        return w, b

    w1, b1 = lin(ks[0], ks[1], state_dim, HIDDEN)
    w2, b2 = lin(ks[2], ks[3], HIDDEN, HIDDEN)
    w3, b3 = lin(ks[4], ks[5], HIDDEN, 1)
    g1 = 1.0 + 0.1 * jax.random.normal(ks[6], (1, HIDDEN), jnp.float32)
    be1 = 0.1 * jax.random.normal(ks[7], (1, HIDDEN), jnp.float32)
    g2 = 1.0 + 0.1 * jax.random.normal(ks[8], (1, HIDDEN), jnp.float32)
    be2 = 0.1 * jax.random.normal(ks[9], (1, HIDDEN), jnp.float32)
    return (w1, b1, g1, be1, w2, b2, g2, be2, w3, b3)


def reference_forward(state, params):
    """Pure-JAX reference mirroring the kernel's bf16 matmul / fp32 LN math
    (standard, un-fused LayerNorm-2 affine + head)."""
    w1, b1, g1, be1, w2, b2, g2, be2, w3, b3 = params
    h = jnp.dot(state.astype(jnp.bfloat16), w1.astype(jnp.bfloat16),
                preferred_element_type=jnp.float32) + b1
    h = _layer_norm(_leaky_relu(h), g1, be1)
    h = jnp.dot(h.astype(jnp.bfloat16), w2.astype(jnp.bfloat16),
                preferred_element_type=jnp.float32) + b2
    h = _layer_norm(_leaky_relu(h), g2, be2)
    return h @ w3 + b3


if __name__ == "__main__":
    key = jax.random.PRNGKey(0)
    k_params, k_x1, k_x2 = jax.random.split(key, 3)

    state_dim = 32
    params = init_params(k_params, state_dim)

    # Small inference-sized batch (tile clamps to 8, single grid step).
    state_small = jax.random.normal(k_x1, (8, state_dim), jnp.float32)
    out_small = jax.block_until_ready(critic_forward(state_small, params))
    ref_small = reference_forward(state_small, params)
    assert out_small.shape == (8, 1)
    assert jnp.allclose(out_small, ref_small, atol=1e-3, rtol=1e-3), (out_small, ref_small)

    # Batch that does not divide the tile: exercises padding + 2 grid steps
    # (the path v7x shards across its two TensorCores).
    state_med = jax.random.normal(k_x2, (160, state_dim), jnp.float32)
    out_med = jax.block_until_ready(critic_forward(state_med, params))
    ref_med = reference_forward(state_med, params)
    assert out_med.shape == (160, 1)
    assert jnp.allclose(out_med, ref_med, atol=1e-3, rtol=1e-3)

    print("KERNEL_OK")
</pallas_src>

<mosaic_0001>
module attributes {stable_mosaic.version = 11 : i64} {
  func.func @critic_kernel(%arg0: i32, %arg1: memref<8x32xbf16, #tpu.memory_space<vmem>>, %arg2: memref<32x256xbf16, #tpu.memory_space<vmem>>, %arg3: memref<256x256xbf16, #tpu.memory_space<vmem>>, %arg4: memref<8x256xf32, #tpu.memory_space<vmem>>, %arg5: memref<8x1xf32, #tpu.memory_space<vmem>>) attributes {dimension_semantics = [#tpu.dimension_semantics<parallel>], iteration_bounds = array<i64: 1>, scalar_prefetch = 0 : i64, scratch_operands = 0 : i64, tpu.core_type = #tpu.core_type<tc>, window_params = [{transform_indices = @transform_0, window_bounds = array<i64: 8, 32>}, {pipeline_mode = #tpu.pipeline_mode<synchronous>, transform_indices = @transform_1, window_bounds = array<i64: 32, 256>}, {pipeline_mode = #tpu.pipeline_mode<synchronous>, transform_indices = @transform_2, window_bounds = array<i64: 256, 256>}, {pipeline_mode = #tpu.pipeline_mode<synchronous>, transform_indices = @transform_3, window_bounds = array<i64: 8, 256>}, {transform_indices = @transform_4, window_bounds = array<i64: 8, 1>}]} {
    %c0 = arith.constant 0 : index
    %c0_0 = arith.constant 0 : index
    %0 = vector.load %arg4[%c0, %c0_0] : memref<8x256xf32, #tpu.memory_space<vmem>>, vector<1x256xf32>
    %c1 = arith.constant 1 : index
    %c0_1 = arith.constant 0 : index
    %1 = vector.load %arg4[%c1, %c0_1] : memref<8x256xf32, #tpu.memory_space<vmem>>, vector<1x256xf32>
    %c2 = arith.constant 2 : index
    %c0_2 = arith.constant 0 : index
    %2 = vector.load %arg4[%c2, %c0_2] : memref<8x256xf32, #tpu.memory_space<vmem>>, vector<1x256xf32>
    %c3 = arith.constant 3 : index
    %c0_3 = arith.constant 0 : index
    %3 = vector.load %arg4[%c3, %c0_3] : memref<8x256xf32, #tpu.memory_space<vmem>>, vector<1x256xf32>
    %c4 = arith.constant 4 : index
    %c0_4 = arith.constant 0 : index
    %4 = vector.load %arg4[%c4, %c0_4] : memref<8x256xf32, #tpu.memory_space<vmem>>, vector<1x256xf32>
    %c5 = arith.constant 5 : index
    %c0_5 = arith.constant 0 : index
    %5 = vector.load %arg4[%c5, %c0_5] : memref<8x256xf32, #tpu.memory_space<vmem>>, vector<1x1xf32>
    %c0_6 = arith.constant 0 : index
    %c0_7 = arith.constant 0 : index
    %6 = vector.load %arg1[%c0_6, %c0_7] : memref<8x32xbf16, #tpu.memory_space<vmem>>, vector<8x32xbf16>
    %c0_8 = arith.constant 0 : index
    %c0_9 = arith.constant 0 : index
    %7 = vector.load %arg2[%c0_8, %c0_9] : memref<32x256xbf16, #tpu.memory_space<vmem>>, vector<32x256xbf16>
    %cst = arith.constant dense<0.000000e+00> : vector<8x256xf32>
    %8 = tpu.matmul %6, %7, %cst {dimension_numbers = #tpu.dot_dimension_numbers<[1], [0], [0], [1], [0, 0, 1, 1], [], []>} : vector<8x32xbf16>, vector<32x256xbf16>, vector<8x256xf32> -> vector<8x256xf32>
    %9 = vector.broadcast %0 : vector<1x256xf32> to vector<8x256xf32>
    %10 = arith.addf %8, %9 : vector<8x256xf32>
    %cst_10 = arith.constant 0.00999999977 : f32
    %11 = vector.broadcast %cst_10 : f32 to vector<8x256xf32>
    %12 = arith.mulf %11, %10 : vector<8x256xf32>
    %13 = arith.maximumf %10, %12 : vector<8x256xf32>
    %cst_11 = arith.constant dense<0.000000e+00> : vector<8xf32>
    %14 = vector.multi_reduction <add>, %13, %cst_11 [1] : vector<8x256xf32> to vector<8xf32>
    %15 = vector.shape_cast %14 : vector<8xf32> to vector<8x1xf32>
    %cst_12 = arith.constant 2.560000e+02 : f32
    %16 = vector.broadcast %cst_12 : f32 to vector<8x1xf32>
    %17 = arith.divf %15, %16 : vector<8x1xf32>
    %18 = vector.broadcast %17 : vector<8x1xf32> to vector<8x256xf32>
    %19 = arith.subf %13, %18 : vector<8x256xf32>
    %20 = arith.mulf %19, %19 : vector<8x256xf32>
    %cst_13 = arith.constant dense<0.000000e+00> : vector<8xf32>
    %21 = vector.multi_reduction <add>, %20, %cst_13 [1] : vector<8x256xf32> to vector<8xf32>
    %22 = vector.shape_cast %21 : vector<8xf32> to vector<8x1xf32>
    %cst_14 = arith.constant 2.560000e+02 : f32
    %23 = vector.broadcast %cst_14 : f32 to vector<8x1xf32>
    %24 = arith.divf %22, %23 : vector<8x1xf32>
    %cst_15 = arith.constant 9.99999974E-6 : f32
    %25 = vector.broadcast %cst_15 : f32 to vector<8x1xf32>
    %26 = arith.addf %24, %25 : vector<8x1xf32>
    %27 = math.rsqrt %26 : vector<8x1xf32>
    %28 = vector.broadcast %27 : vector<8x1xf32> to vector<8x256xf32>
    %29 = arith.mulf %19, %28 : vector<8x256xf32>
    %30 = vector.broadcast %1 : vector<1x256xf32> to vector<8x256xf32>
    %31 = arith.mulf %29, %30 : vector<8x256xf32>
    %32 = vector.broadcast %2 : vector<1x256xf32> to vector<8x256xf32>
    %33 = arith.addf %31, %32 : vector<8x256xf32>
    %34 = arith.truncf %33 : vector<8x256xf32> to vector<8x256xbf16>
    %c0_16 = arith.constant 0 : index
    %c0_17 = arith.constant 0 : index
    %35 = vector.load %arg3[%c0_16, %c0_17] : memref<256x256xbf16, #tpu.memory_space<vmem>>, vector<256x256xbf16>
    %cst_18 = arith.constant dense<0.000000e+00> : vector<8x256xf32>
    %36 = tpu.matmul %34, %35, %cst_18 {dimension_numbers = #tpu.dot_dimension_numbers<[1], [0], [0], [1], [0, 0, 1, 1], [], []>} : vector<8x256xbf16>, vector<256x256xbf16>, vector<8x256xf32> -> vector<8x256xf32>
    %37 = vector.broadcast %3 : vector<1x256xf32> to vector<8x256xf32>
    %38 = arith.addf %36, %37 : vector<8x256xf32>
    %cst_19 = arith.constant 0.00999999977 : f32
    %39 = vector.broadcast %cst_19 : f32 to vector<8x256xf32>
    %40 = arith.mulf %39, %38 : vector<8x256xf32>
    %41 = arith.maximumf %38, %40 : vector<8x256xf32>
    %cst_20 = arith.constant dense<0.000000e+00> : vector<8xf32>
    %42 = vector.multi_reduction <add>, %41, %cst_20 [1] : vector<8x256xf32> to vector<8xf32>
    %43 = vector.shape_cast %42 : vector<8xf32> to vector<8x1xf32>
    %cst_21 = arith.constant 2.560000e+02 : f32
    %44 = vector.broadcast %cst_21 : f32 to vector<8x1xf32>
    %45 = arith.divf %43, %44 : vector<8x1xf32>
    %46 = vector.broadcast %45 : vector<8x1xf32> to vector<8x256xf32>
    %47 = arith.subf %41, %46 : vector<8x256xf32>
    %48 = arith.mulf %47, %47 : vector<8x256xf32>
    %cst_22 = arith.constant dense<0.000000e+00> : vector<8xf32>
    %49 = vector.multi_reduction <add>, %48, %cst_22 [1] : vector<8x256xf32> to vector<8xf32>
    %50 = vector.shape_cast %49 : vector<8xf32> to vector<8x1xf32>
    %cst_23 = arith.constant 2.560000e+02 : f32
    %51 = vector.broadcast %cst_23 : f32 to vector<8x1xf32>
    %52 = arith.divf %50, %51 : vector<8x1xf32>
    %cst_24 = arith.constant 9.99999974E-6 : f32
    %53 = vector.broadcast %cst_24 : f32 to vector<8x1xf32>
    %54 = arith.addf %52, %53 : vector<8x1xf32>
    %55 = math.rsqrt %54 : vector<8x1xf32>
    %56 = vector.broadcast %55 : vector<8x1xf32> to vector<8x256xf32>
    %57 = arith.mulf %47, %56 : vector<8x256xf32>
    %58 = vector.broadcast %4 : vector<1x256xf32> to vector<8x256xf32>
    %59 = arith.mulf %57, %58 : vector<8x256xf32>
    %cst_25 = arith.constant dense<0.000000e+00> : vector<8xf32>
    %60 = vector.multi_reduction <add>, %59, %cst_25 [1] : vector<8x256xf32> to vector<8xf32>
    %61 = vector.shape_cast %60 : vector<8xf32> to vector<8x1xf32>
    %62 = vector.broadcast %5 : vector<1x1xf32> to vector<8x1xf32>
    %63 = arith.addf %61, %62 : vector<8x1xf32>
    %c0_26 = arith.constant 0 : index
    %c0_27 = arith.constant 0 : index
    %64 = vector.load %arg5[%c0_26, %c0_27] : memref<8x1xf32, #tpu.memory_space<vmem>>, vector<8x1xf32>
    tpu.vector_store %arg5[%c0_26, %c0_27], %63 {strides = array<i32>} : memref<8x1xf32, #tpu.memory_space<vmem>>, vector<8x1xf32>,
    return
  }
  func.func @transform_0(%arg0: i32) -> (i32, i32) {
    %c0_i32 = arith.constant 0 : i32
    %c0_i32_0 = arith.constant 0 : i32
    return %arg0, %c0_i32 : i32, i32
  }
  func.func @transform_1(%arg0: i32) -> (i32, i32) {
    %c0_i32 = arith.constant 0 : i32
    %c0_i32_0 = arith.constant 0 : i32
    %c0_i32_1 = arith.constant 0 : i32
    return %c0_i32, %c0_i32_0 : i32, i32
  }
  func.func @transform_2(%arg0: i32) -> (i32, i32) {
    %c0_i32 = arith.constant 0 : i32
    %c0_i32_0 = arith.constant 0 : i32
    %c0_i32_1 = arith.constant 0 : i32
    return %c0_i32, %c0_i32_0 : i32, i32
  }
  func.func @transform_3(%arg0: i32) -> (i32, i32) {
    %c0_i32 = arith.constant 0 : i32
    %c0_i32_0 = arith.constant 0 : i32
    %c0_i32_1 = arith.constant 0 : i32
    return %c0_i32, %c0_i32_0 : i32, i32
  }
  func.func @transform_4(%arg0: i32) -> (i32, i32) {
    %c0_i32 = arith.constant 0 : i32
    %c0_i32_0 = arith.constant 0 : i32
    return %arg0, %c0_i32 : i32, i32
  }
}

</mosaic_0001>

<bundles_post_ra>
// kernel: tpu_custom_call.1
= control target key start
LH: loop header
LB: loop body
LE: loop exit
PB: predicated region body
PF: predicated region fallthrough
CT: control target
= control target key end

     0   :  { %9 = vsyncpa [#allocation3], 0  ;;  %s798_s0 = inlined_call_operand.hbm [shape: bf16[8,32], index: 0, kind: input, shape index: {}]   ;;  %s799_s1 = inlined_call_operand.hbm [shape: bf16[32,256], index: 1, kind: input, shape index: {}]   ;;  %s800_s2 = inlined_call_operand.hbm [shape: bf16[256,256], index: 2, kind: input, shape index: {}]   ;;  %s801_s3 = inlined_call_operand.hbm [shape: f32[8,256], index: 3, kind: input, shape index: {}]   ;;  %s802_s4 = inlined_call_operand.vmem [shape: f32[8,1], index: 4, kind: output, shape index: {}]  }
   0x1   :  { %10 = vsyncpa [#allocation5], 0 }
   0x2   :  { %11 = vsyncpa [#allocation8], 0  ;;  %s695_s15 = smov [#allocation4]   ;;  %s601_s19 = scalar_lea.hbm %s799_s1, 512 }
   0x3   :  { %s27_s16 = sshll.u32 %s695_s15, 4  ;;  %p602_p0 = scmp.ne.s32.totalorder %s799_s1, %s601_s19  ;;  %s28_s16 = int_to_ptr.vmem [resolvable:$true] %s27_s16 }
   0x4   :  { %p605_p1 = scmp.lt.u32.totalorder %s601_s19, %s799_s1 }
   0x6   :  { %p607_p2 = pnand %p605_p1, %p602_p0 }
   0x8   :  { %610 = shalt.err (!%p607_p2)
}
   0x9   :  { %s611_s24 = scalar_lea.vmem %s28_s16, 512  ;;  %p616_p4 = scmp.lt.s32.totalorder %s28_s16, %s28_s16 }
   0xa   :  { %p612_p3 = scmp.ne.s32.totalorder %s28_s16, %s611_s24  ;;  %p617_p5 = scmp.lt.s32.totalorder %s611_s24, %s611_s24 }
   0xc   :  { %p618_p6 = por %p617_p5, %p616_p4 }
   0xe   :  { %p619_p7 = pnand %p618_p6, %p612_p3 }
  0x10   :  { %622 = shalt.err (!%p619_p7)
}
  0x11   :  { %s696_s25 = smov 128   ;;  %s697_s26 = smov 8  }
  0x12   :  { %33 = dma.hbm_to_vmem [thread:$0]  %s799_s1, 512, %s28_s16, [#allocation5], %s696_s25, %s696_s25, %s697_s26  }
  0x13   :  { %s698_s29 = smov [#allocation2]   ;;  %s699_s5 = smov [#allocation6]  }
  0x14   :  { %s18_s30 = sshll.u32 %s698_s29, 4  ;;  %s39_s6 = sshll.u32 %s699_s5, 4  ;;  %s19_s30 = int_to_ptr.vmem [resolvable:$true] %s18_s30  ;;  %s40_s6 = int_to_ptr.vmem [resolvable:$true] %s39_s6 }
  0x15   :  { %s623_s9 = scalar_lea.hbm %s798_s0, 64 }
  0x16   :  { %p624_p8 = scmp.ne.s32.totalorder %s798_s0, %s623_s9  ;;  %p627_p9 = scmp.lt.u32.totalorder %s623_s9, %s798_s0 }
  0x18   :  { %p629_p10 = pnand %p627_p9, %p624_p8 }
  0x1a   :  { %632 = shalt.err (!%p629_p10)
}
  0x1b   :  { %s633_s1 = scalar_lea.vmem %s19_s30, 64  ;;  %p638_p12 = scmp.lt.s32.totalorder %s19_s30, %s19_s30 }
  0x1c   :  { %p634_p11 = scmp.ne.s32.totalorder %s19_s30, %s633_s1  ;;  %p639_p13 = scmp.lt.s32.totalorder %s633_s1, %s633_s1 }
  0x1e   :  { %p640_p0 = por %p639_p13, %p638_p12 }
  0x20   :  { %p641_p1 = pnand %p640_p0, %p634_p11 }
  0x22   :  { %644 = shalt.err (!%p641_p1)
}
  0x23   :  { %21 = dma.hbm_to_vmem [thread:$0]  %s798_s0, 64, %s19_s30, [#allocation3]  }
  0x24   :  { %s645_s18 = scalar_lea.hbm %s800_s2, 4096 }
  0x25   :  { %p646_p2 = scmp.ne.s32.totalorder %s800_s2, %s645_s18  ;;  %p649_p3 = scmp.lt.u32.totalorder %s645_s18, %s800_s2 }
  0x27   :  { %p651_p4 = pnand %p649_p3, %p646_p2 }
  0x29   :  { %654 = shalt.err (!%p651_p4)
}
  0x2a   :  { %s655_s23 = scalar_lea.vmem %s40_s6, 4096  ;;  %p660_p6 = scmp.lt.s32.totalorder %s40_s6, %s40_s6 }
  0x2b   :  { %p656_p5 = scmp.ne.s32.totalorder %s40_s6, %s655_s23  ;;  %p661_p7 = scmp.lt.s32.totalorder %s655_s23, %s655_s23 }
  0x2d   :  { %p662_p8 = por %p661_p7, %p660_p6 }
  0x2f   :  { %p663_p9 = pnand %p662_p8, %p656_p5 }
  0x31   :  { %666 = shalt.err (!%p663_p9)
}
  0x32   :  { %45 = dma.hbm_to_vmem [thread:$0]  %s800_s2, 4096, %s40_s6, [#allocation5], %s696_s25, %s696_s25, %s697_s26  }
  0x33   :  { %s700_s27 = smov [#allocation7]   ;;  %s667_s5 = scalar_lea.hbm %s801_s3, 256 }
  0x34   :  { %s52_s28 = sshll.u32 %s700_s27, 4  ;;  %p668_p10 = scmp.ne.s32.totalorder %s801_s3, %s667_s5  ;;  %s53_s28 = int_to_ptr.vmem [resolvable:$true] %s52_s28 }
  0x35   :  { %p671_p11 = scmp.lt.u32.totalorder %s667_s5, %s801_s3 }
  0x37   :  { %p673_p12 = pnand %p671_p11, %p668_p10 }
  0x39   :  { %676 = shalt.err (!%p673_p12)
}
  0x3a   :  { %s677_s11 = scalar_lea.vmem %s53_s28, 256  ;;  %p682_p0 = scmp.lt.s32.totalorder %s53_s28, %s53_s28 }
  0x3b   :  { %p678_p13 = scmp.ne.s32.totalorder %s53_s28, %s677_s11  ;;  %p683_p1 = scmp.lt.s32.totalorder %s677_s11, %s677_s11 }
  0x3d   :  { %p684_p2 = por %p683_p1, %p682_p0 }
  0x3f   :  { %p685_p3 = pnand %p684_p2, %p678_p13 }
  0x41   :  { %688 = shalt.err (!%p685_p3)
}
  0x42   :  { %55 = dma.hbm_to_vmem [thread:$0]  %s801_s3, 256, %s53_s28, [#allocation8]  }
  0x43   :  { %689 = dma.done.wait [#allocation3], 64  }
  0x44   :  { %690 = vsyncadd [#allocation3], 4294967232 }
  0x45   :  { %691 = dma.done.wait [#allocation5], 4608  }
  0x46   :  { %692 = vsyncadd [#allocation5], 4294962688 }
  0x47   :  { %693 = dma.done.wait [#allocation8], 256  }
  0x48   :  { %694 = vsyncadd [#allocation8], 4294967040  ;;  %v701_v0 = vmov 0   ;;  %v543_v1 = vld [vmem:[#allocation4 + $0x4] ss:$8 sps:$4 sm:$0xff]   ;;  %vm115_vm0 = vcmask 261120   ;;  %v85_v6 = vlaneseq }
  0x49   :  { %151 = vmatprep.mubr.bf16.mxu0 %v701_v0  ;;  %v545_v2 = vld [vmem:[#allocation4] ss:$8 sps:$4 sm:$0xff]   ;;  %119 = vmatprep.subr.bf16.mxu0 %v543_v1  ;;  %v546_v3 = vld [vmem:[#allocation4 + $0x14] ss:$8 sps:$4 sm:$0xff]   ;;  %v548_v4 = vld [vmem:[#allocation4 + $0x10] ss:$8 sps:$4 sm:$0xff]  }
  0x4a   :  { %120 = vmatpush1.bf16.msra.mxu0 %v545_v2  ;;  %v79_v5 = vld [vmem:[#allocation2] sm:$0xf]  ;;  %v86_v7 = vshrl.u32 %v85_v6, 7  ;;  %v69_v9 = vld [vmem:[#allocation7] ss:$8 sm:$0x3] }
  0x4b   :  { %121 = vmatprep.subr.bf16.mxu0 %v546_v3  ;;  %v549_v24 = vld [vmem:[#allocation6 + $0x4] ss:$8 sps:$4 sm:$0xff]   ;;  %v551_v25 = vld [vmem:[#allocation6] ss:$8 sps:$4 sm:$0xff]   ;;  %v552_v26 = vld [vmem:[#allocation6 + $0x14] ss:$8 sps:$4 sm:$0xff]  }
  0x4c   :  { %v781_v8 = vsub.s32 0, %v86_v7  ;;  %v783_v10 = vsub.s32 1, %v86_v7  ;;  %412 = vmatprep.subr.bf16.mxu1 %v549_v24  ;;  %v554_v27 = vld [vmem:[#allocation6 + $0x10] ss:$8 sps:$4 sm:$0xff]   ;;  %v555_v28 = vld [vmem:[#allocation6 + $0x24] ss:$8 sps:$4 sm:$0xff]  }
  0x4d   :  { %413 = vmatpush1.bf16.msra.mxu1 %v551_v25  ;;  %v557_v29 = vld [vmem:[#allocation6 + $0x20] ss:$8 sps:$4 sm:$0xff]   ;;  %v558_v30 = vld [vmem:[#allocation6 + $0x34] ss:$8 sps:$4 sm:$0xff]   ;;  %v560_v31 = vld [vmem:[#allocation6 + $0x30] ss:$8 sps:$4 sm:$0xff]  }
  0x4e   :  { %122 = vmatpush1.bf16.msra.mxu0 %v548_v4  ;;  %v88_v11 = vrot.slane %v69_v9, %v781_v8  ;;  %v92_v12 = vrot.slane %v69_v9, %v783_v10  ;;  %414 = vmatprep.subr.bf16.mxu1 %v552_v26  ;;  %v561_v32 = vld [vmem:[#allocation6 + $0x44] ss:$8 sps:$4 sm:$0xff]   ;;  %v563_v33 = vld [vmem:[#allocation6 + $0x40] ss:$8 sps:$4 sm:$0xff]   ;;  %v564_v34 = vld [vmem:[#allocation6 + $0x54] ss:$8 sps:$4 sm:$0xff]  }
  0x4f   :  { %v566_v35 = vld [vmem:[#allocation6 + $0x50] ss:$8 sps:$4 sm:$0xff]   ;;  %v567_v36 = vld [vmem:[#allocation6 + $0x64] ss:$8 sps:$4 sm:$0xff]   ;;  %v569_v37 = vld [vmem:[#allocation6 + $0x60] ss:$8 sps:$4 sm:$0xff]  }
  0x50   :  { %v570_v38 = vld [vmem:[#allocation6 + $0x74] ss:$8 sps:$4 sm:$0xff]   ;;  %v572_v39 = vld [vmem:[#allocation6 + $0x70] ss:$8 sps:$4 sm:$0xff]   ;;  %v573_v40 = vld [vmem:[#allocation6 + $0x84] ss:$8 sps:$4 sm:$0xff]  }
  0x51   :  { %503 = vmatmul.mubr.msk.bf16.vlgmr.msra.gmra.mrb[0].mxu0 %vm115_vm0, %v79_v5  ;;  %415 = vmatpush1.bf16.msra.mxu1 %v554_v27  ;;  %v575_v41 = vld [vmem:[#allocation6 + $0x80] ss:$8 sps:$4 sm:$0xff]   ;;  %v576_v42 = vld [vmem:[#allocation6 + $0x94] ss:$8 sps:$4 sm:$0xff]   ;;  %v578_v43 = vld [vmem:[#allocation6 + $0x90] ss:$8 sps:$4 sm:$0xff]  }
  0x52   :  { %416 = vmatprep.subr.bf16.mxu1 %v555_v28  ;;  %v579_v51 = vld [vmem:[#allocation6 + $0xa4] ss:$8 sps:$4 sm:$0xff]   ;;  %v581_v52 = vld [vmem:[#allocation6 + $0xa0] ss:$8 sps:$4 sm:$0xff]   ;;  %v582_v53 = vld [vmem:[#allocation6 + $0xb4] ss:$8 sps:$4 sm:$0xff]  }
  0x53   :  { %v584_v54 = vld [vmem:[#allocation6 + $0xb0] ss:$8 sps:$4 sm:$0xff]   ;;  %v585_v55 = vld [vmem:[#allocation6 + $0xc4] ss:$8 sps:$4 sm:$0xff]   ;;  %v587_v56 = vld [vmem:[#allocation6 + $0xc0] ss:$8 sps:$4 sm:$0xff]  }
  0x54   :  { %v588_v57 = vld [vmem:[#allocation6 + $0xd4] ss:$8 sps:$4 sm:$0xff]   ;;  %v590_v58 = vld [vmem:[#allocation6 + $0xd0] ss:$8 sps:$4 sm:$0xff]   ;;  %v591_v59 = vld [vmem:[#allocation6 + $0xe4] ss:$8 sps:$4 sm:$0xff]  }
  0x55   :  { %417 = vmatpush1.bf16.msra.mxu1 %v557_v29  ;;  %v593_v60 = vld [vmem:[#allocation6 + $0xe0] ss:$8 sps:$4 sm:$0xff]   ;;  %v594_v61 = vld [vmem:[#allocation6 + $0xf4] ss:$8 sps:$4 sm:$0xff]   ;;  %v596_v62 = vld [vmem:[#allocation6 + $0xf0] ss:$8 sps:$4 sm:$0xff]  }
  0x56   :  { %418 = vmatprep.subr.bf16.mxu1 %v558_v30  ;;  %v71_v2 = vld [vmem:[#allocation7 + $0x1] ss:$8 sm:$0x3]  ;;  %v73_v3 = vld [vmem:[#allocation7 + $0x2] ss:$8 sm:$0x3] }
  0x57   :  { %v185_v4 = vrot.slane %v71_v2, %v781_v8  ;;  %v189_v5 = vrot.slane %v71_v2, %v783_v10  ;;  %v198_v9 = vrot.slane %v73_v3, %v781_v8  ;;  %vm490_vm1 = vcmask 7168  }
  0x59   :  { %419 = vmatpush1.bf16.msra.mxu1 %v560_v31 }
  0x5a   :  { %420 = vmatprep.subr.bf16.mxu1 %v561_v32 }
  0x5d   :  { %421 = vmatpush1.bf16.msra.mxu1 %v563_v33 }
  0x5e   :  { %422 = vmatprep.subr.bf16.mxu1 %v564_v34 }
  0x61   :  { %423 = vmatpush1.bf16.msra.mxu1 %v566_v35 }
  0x62   :  { %424 = vmatprep.subr.bf16.mxu1 %v567_v36 }
  0x65   :  { %425 = vmatpush1.bf16.msra.mxu1 %v569_v37 }
  0x66   :  { %426 = vmatprep.subr.bf16.mxu1 %v570_v38 }
  0x69   :  { %427 = vmatpush1.bf16.msra.mxu1 %v572_v39 }
  0x6a   :  { %428 = vmatprep.subr.bf16.mxu1 %v573_v40 }
  0x6d   :  { %429 = vmatpush1.bf16.msra.mxu1 %v575_v41 }
  0x6e   :  { %430 = vmatprep.subr.bf16.mxu1 %v576_v42 }
  0x71   :  { %431 = vmatpush1.bf16.msra.mxu1 %v578_v43  ;;  %v77_v43 = vld [vmem:[#allocation7 + $0x4] ss:$8 sm:$0x3] }
  0x72   :  { %432 = vmatprep.subr.bf16.mxu1 %v579_v51 }
  0x75   :  { %433 = vmatpush1.bf16.msra.mxu1 %v581_v52  ;;  %v78_v52 = vld [vmem:[#allocation7 + $0x5] ss:$0 sm:$0xff] }
  0x76   :  { %434 = vmatprep.subr.bf16.mxu1 %v582_v53 }
  0x79   :  { %435 = vmatpush1.bf16.msra.mxu1 %v584_v54 }
  0x7a   :  { %436 = vmatprep.subr.bf16.mxu1 %v585_v55 }
  0x7d   :  { %437 = vmatpush1.bf16.msra.mxu1 %v587_v56 }
  0x7e   :  { %438 = vmatprep.subr.bf16.mxu1 %v588_v57 }
  0x81   :  { %439 = vmatpush1.bf16.msra.mxu1 %v590_v58 }
  0x82   :  { %440 = vmatprep.subr.bf16.mxu1 %v591_v59 }
  0x85   :  { %441 = vmatpush1.bf16.msra.mxu1 %v593_v60 }
  0x86   :  { %442 = vmatprep.subr.bf16.mxu1 %v594_v61 }
  0x89   :  { %443 = vmatpush1.bf16.msra.mxu1 %v596_v62 }
 0x124   :  { %v153_v13 = vpop.f32.mrb[0].mxu0 }
 0x125   :  { %v154_v14 = vadd.f32 %v153_v13, %v88_v11  ;;  %v155_v15 = vpop.f32.mrb[1].mxu0  ;;  %v202_v11 = vrot.slane %v73_v3, %v783_v10 }
 0x126   :  { %v156_v16 = vadd.f32 %v155_v15, %v92_v12  ;;  %v157_v17 = vpop.f32.mrb[2].mxu0 }
 0x127   :  { %v160_v18 = vmul.f32 0.01, %v154_v14  ;;  %v158_v19 = vpop.f32.mrb[3].mxu0 }
 0x128   :  { %v161_v20 = vmul.f32 0.01, %v156_v16  ;;  %v75_v19 = vld [vmem:[#allocation7 + $0x3] ss:$8 sm:$0x3] }
 0x129   :  { %v162_v21 = vmax.f32 %v154_v14, %v160_v18 }
 0x12a   :  { %v163_v22 = vmax.f32 %v156_v16, %v161_v20  ;;  %v245_v20 = vrot.slane %v75_v19, %v781_v8 }
 0x12c   :  { %v164_v23 = vadd.f32 %v163_v22, %v162_v21 }
 0x12e   :  { %165 = vadd.xlane.f32.xlu0 %v164_v23 }
 0x1bb   :  { %v166_v44 = vpop.xlane.xlu0 %165 }
 0x1bc   :  { %v168_v45 = vmul.f32 0.00390625, %v166_v44  ;;  %v477_v44 = vrot.slane %v77_v43, %v781_v8 }
 0x1be   :  { %v169_v46 = vsub.f32 %v162_v21, %v168_v45  ;;  %v170_v47 = vsub.f32 %v163_v22, %v168_v45  ;;  %v249_v21 = vrot.slane %v75_v19, %v783_v10  ;;  %v481_v45 = vrot.slane %v77_v43, %v783_v10 }
 0x1c0   :  { %v171_v48 = vmul.f32 %v169_v46, %v169_v46  ;;  %v172_v49 = vmul.f32 %v170_v47, %v170_v47 }
 0x1c2   :  { %v173_v50 = vadd.f32 %v172_v49, %v171_v48 }
 0x1c4   :  { %174 = vadd.xlane.f32.xlu0 %v173_v50 }
 0x251   :  { %v175_v63 = vpop.xlane.xlu0 %174 }
 0x252   :  { %v176_v0 = vmul.f32 0.00390625, %v175_v63 }
 0x254   :  { %v177_v1 = vadd.f32 1e-05, %v176_v0 }
 0x256   :  { %597 = vrsqrt.f32 %v177_v1 }
 0x260   :  { %v598_v6 = vpop.eup %597 }
 0x261   :  { %v180_v7 = vmul.f32 %v598_v6, %v170_v47  ;;  %v179_v12 = vmul.f32 %v598_v6, %v169_v46 }
 0x263   :  { %v193_v13 = vmul.f32 %v189_v5, %v180_v7  ;;  %v192_v14 = vmul.f32 %v185_v4, %v179_v12 }
 0x265   :  { %v206_v15 = vadd.f32 %v202_v11, %v193_v13  ;;  %v205_v16 = vadd.f32 %v198_v9, %v192_v14 }
 0x267   :  { %v208_v17 = vpack.c.bf16 %v206_v15, %v206_v15  ;;  %v207_v18 = vpack.c.bf16 %v205_v16, %v205_v16 }
 0x269   :  { %444 = vmatprep.mubr.bf16.mxu1 %v208_v17 }
 0x26a   :  { %445 = vmatmul.mubr.bf16.vlgmr.msra.gmra.mrb[0].mxu1 %v207_v18 }
 0x33d   :  { %v446_v22 = vpop.f32.mrb[0].mxu1 }
 0x33e   :  { %v447_v23 = vadd.f32 %v446_v22, %v245_v20  ;;  %v448_v24 = vpop.f32.mrb[1].mxu1 }
 0x33f   :  { %v449_v25 = vadd.f32 %v448_v24, %v249_v21  ;;  %v450_v26 = vpop.f32.mrb[2].mxu1 }
 0x340   :  { %v453_v27 = vmul.f32 0.01, %v447_v23  ;;  %v451_v28 = vpop.f32.mrb[3].mxu1 }
 0x341   :  { %v454_v29 = vmul.f32 0.01, %v449_v25 }
 0x342   :  { %v455_v30 = vmax.f32 %v447_v23, %v453_v27 }
 0x343   :  { %v456_v31 = vmax.f32 %v449_v25, %v454_v29 }
 0x345   :  { %v457_v32 = vadd.f32 %v456_v31, %v455_v30 }
 0x347   :  { %458 = vadd.xlane.f32.xlu1 %v457_v32 }
 0x3d4   :  { %v459_v33 = vpop.xlane.xlu1 %458 }
 0x3d5   :  { %v460_v34 = vmul.f32 0.00390625, %v459_v33 }
 0x3d7   :  { %v461_v35 = vsub.f32 %v455_v30, %v460_v34  ;;  %v462_v36 = vsub.f32 %v456_v31, %v460_v34 }
 0x3d9   :  { %v463_v37 = vmul.f32 %v461_v35, %v461_v35  ;;  %v464_v38 = vmul.f32 %v462_v36, %v462_v36 }
 0x3db   :  { %v465_v39 = vadd.f32 %v464_v38, %v463_v37 }
 0x3dd   :  { %466 = vadd.xlane.f32.xlu1 %v465_v39 }
 0x46a   :  { %v467_v40 = vpop.xlane.xlu1 %466 }
 0x46b   :  { %v468_v41 = vmul.f32 0.00390625, %v467_v40 }
 0x46d   :  { %v469_v42 = vadd.f32 1e-05, %v468_v41 }
 0x46f   :  { %599 = vrsqrt.f32 %v469_v42 }
 0x479   :  { %v600_v46 = vpop.eup %599 }
 0x47a   :  { %v471_v47 = vmul.f32 %v600_v46, %v461_v35  ;;  %v472_v48 = vmul.f32 %v600_v46, %v462_v36 }
 0x47c   :  { %v484_v49 = vmul.f32 %v477_v44, %v471_v47  ;;  %v485_v50 = vmul.f32 %v481_v45, %v472_v48 }
 0x47e   :  { %v486_v51 = vadd.f32 %v485_v50, %v484_v49 }
 0x480   :  { %487 = vadd.xlane.f32.xlu0 %v486_v51 }
 0x50d   :  { %v488_v53 = vpop.xlane.xlu0 %487 }
 0x50e   :  { %v489_v54 = vadd.f32 %v488_v53, %v78_v52 }
 0x510   :  { %491 = vst.msk [vmem:[%s802_s4] sm:$0xff] %vm490_vm1, %v489_v54 }
 0x511   :  { %496 = vsyncpa [#allocation3], 1 }
 0x512   :  { %497 = vsyncpa [#allocation5], 1 }
 0x513   :  { %498 = vsyncpa [#allocation8], 1 }

</bundles_post_ra>
